<compile_context>
chip_gen: v7x
topology: tpu7x:2x2x1
jax: 0.10.0
libtpu: 0.0.40
codegen_flags: <defaults>
</compile_context>

<pallas_src>
import functools

import jax
import jax.numpy as jnp
from jax.experimental import pallas as pl
from jax.experimental.pallas import tpu as pltpu


def _round_up(x, m):
    return (x + m - 1) // m * m


# ----------------------------- Kernel 1: attention pooling ----------------------------- #

def _pool_kernel(attn_ref, feat_ref, fm_ref):
    """attn_ref: (1, M, thw) f32; feat_ref: (1, N, thw) f32; fm_ref: (1, M, N) f32 (resident)."""
    h = pl.program_id(1)

    @pl.when(h == 0)
    def _init():
        fm_ref[...] = jnp.zeros_like(fm_ref)

    # (M, thw) x (N, thw) lane-contraction on the MXU, f32 accumulate into the resident output.
    part = jax.lax.dot_general(
        attn_ref[0], feat_ref[0],
        dimension_numbers=(((1,), (1,)), ((), ())),
        preferred_element_type=jnp.float32)                 # (M, N)
    fm_ref[...] += part[None]

    @pl.when(h == pl.num_programs(1) - 1)
    def _finalize():
        acc = fm_ref[...]
        # F.normalize(p=2, dim=-1, eps=1e-12) == x * rsqrt(max(sum(x^2), 1e-24))
        inv = jax.lax.rsqrt(jnp.maximum(jnp.sum(acc * acc, axis=-1, keepdims=True), 1e-24))
        fm_ref[...] = acc * inv


# ----------------------------- Kernel 2: loss epilogue (tiny, gridless) ----------------------------- #

def _loss_kernel(fm_ref, centers_ref, mask_ref, im_ref, loss_ref, *, alpha, margin):
    """fm_ref: (B, M, N) f32 VMEM; centers_ref: (M, N) f32 VMEM;
    mask_ref / im_ref: (B,) f32 SMEM; loss_ref: (1, 1) f32 SMEM."""
    B, M, N = fm_ref.shape
    centers = centers_ref[...]                                        # (M, N)

    # fcts = alpha * mean_b(mask_b * (fm_b - centers)) + centers
    #      = (alpha / B) * (sum_b mask_b * fm_b - (sum_b mask_b) * centers) + centers
    s_real = jnp.zeros((M, N), jnp.float32)
    n_real = jnp.float32(0.0)
    for b in range(B):                     # B is small & static -> fully unrolled
        m_b = mask_ref[b]
        s_real = s_real + m_b * fm_ref[b]
        n_real = n_real + m_b
    fcts = (alpha / B) * (s_real - n_real * centers) + centers        # (M, N)

    # intra-class loss: mean_b relu(||fm_b - fcts||_F * sign(im_b) - im_b)
    intra = jnp.float32(0.0)
    for b in range(B):
        d = fm_ref[b] - fcts
        nb = jnp.sqrt(jnp.sum(d * d))
        im_b = im_ref[b]
        intra = intra + jnp.maximum(nb * jnp.sign(im_b) - im_b, 0.0)
    intra = intra / B

    # inter-class loss: sum_{j<k} relu(margin - ||fcts_j - fcts_k||) / M / alpha, via Gram matrix.
    gram = jax.lax.dot_general(fcts, fcts, (((1,), (1,)), ((), ())),
                               preferred_element_type=jnp.float32)    # (M, M)
    sq_i = jnp.sum(fcts * fcts, axis=1, keepdims=True)                # (M, 1)  row norms^2
    rows = jax.lax.broadcasted_iota(jnp.int32, (M, M), 0)
    cols = jax.lax.broadcasted_iota(jnp.int32, (M, M), 1)
    sq_j = jnp.sum(jnp.where(rows == cols, gram, 0.0), axis=0, keepdims=True)   # (1, M)
    dist = jnp.sqrt(jnp.maximum(sq_i + sq_j - 2.0 * gram, 0.0))
    upper = cols > rows
    inter = jnp.sum(jnp.where(upper, jnp.maximum(margin - dist, 0.0), 0.0)) / (M * alpha)

    loss_ref[0, 0] = intra + inter


# ----------------------------- Wrapper ----------------------------- #

def auxiliary_loss_v2(feature_map_d, attentions, y, feature_centers,
                      alpha, margin, inner_margin_buf):
    """Forward of Auxiliary_Loss_v2 (eval). Returns (loss_scalar, feature_matrix (B, M, N))."""
    B, N, H, W = feature_map_d.shape
    Ba, M, AH, AW = attentions.shape
    assert Ba == B
    assert (AH, AW) == (H, W), "kernel assumes attention maps already match feature spatial dims"

    HW = H * W
    if HW % 128 == 0:
        # Fast path: raw f32 views, zero extra HBM traffic (reshape is free).
        attn = attentions.reshape(B, M, HW).astype(jnp.float32)
        feat = feature_map_d.reshape(B, N, HW).astype(jnp.float32)
        HWeff = HW
    else:
        # Rare fallback: one f32 zero-pad pass (zeros are benign for the contraction / norm).
        HWeff = _round_up(HW, 128)
        attn = jnp.pad(attentions.reshape(B, M, HW).astype(jnp.float32),
                       ((0, 0), (0, 0), (0, HWeff - HW)))
        feat = jnp.pad(feature_map_d.reshape(B, N, HW).astype(jnp.float32),
                       ((0, 0), (0, 0), (0, HWeff - HW)))

    # HW tile: as large as possible (fewer grid steps; >=1024 tiles sit at ~86% of HBM roofline)
    # while the double-buffered f32 input blocks stay inside a conservative VMEM budget.
    in_budget = 12 << 20
    thw = 128
    for cand in dict.fromkeys((HWeff, 2048, 1024, 512, 256, 128)):
        if HWeff % cand == 0 and 2 * (M + N) * cand * 4 <= in_budget:
            thw = cand
            break

    # Double-buffered inputs + single resident f32 output block, 2x slack, clamped to 32 MiB
    # (<= scoped default on v7x; v5e/v6e have ample physical headroom).
    block_bytes = 2 * (M + N) * thw * 4 + M * N * 4
    vmem_limit = int(min(max(2 * block_bytes, 4 << 20), 32 << 20))

    def pool_call(dim_sem):
        return pl.pallas_call(
            _pool_kernel,
            out_shape=jax.ShapeDtypeStruct((B, M, N), jnp.float32),
            grid=(B, HWeff // thw),
            in_specs=[
                pl.BlockSpec((1, M, thw), lambda b, h: (b, 0, h)),
                pl.BlockSpec((1, N, thw), lambda b, h: (b, 0, h)),
            ],
            out_specs=pl.BlockSpec((1, M, N), lambda b, h: (b, 0, 0)),
            compiler_params=pltpu.CompilerParams(
                dimension_semantics=dim_sem, vmem_limit_bytes=vmem_limit),
        )(attn, feat)

    # v7x has 2 TensorCores/chip; plain "parallel" is a near-no-op there, so request CORE_PARALLEL
    # on the batch axis with a safe fallback for other/older generations.
    try:
        kind = jax.devices()[0].device_kind.lower()
    except Exception:
        kind = ""
    if ("v7" in kind) or ("7x" in kind):
        try:
            fm = pool_call((pltpu.CORE_PARALLEL, pltpu.ARBITRARY))
            jax.block_until_ready(fm)
        except Exception:
            fm = pool_call(("parallel", "arbitrary"))
    else:
        fm = pool_call(("parallel", "arbitrary"))

    # Loss epilogue inputs: per-sample scalars go to SMEM; small dense operands to VMEM.
    real_mask = (y == 0).astype(jnp.float32)               # (B,)
    im_y = inner_margin_buf[y].astype(jnp.float32)         # (B,)
    centers = feature_centers.astype(jnp.float32)          # (M, N)

    loss2d = pl.pallas_call(
        functools.partial(_loss_kernel, alpha=float(alpha), margin=float(margin)),
        out_shape=jax.ShapeDtypeStruct((1, 1), jnp.float32),
        in_specs=[
            pl.BlockSpec(memory_space=pltpu.MemorySpace.VMEM),   # fm
            pl.BlockSpec(memory_space=pltpu.MemorySpace.VMEM),   # feature centers
            pl.BlockSpec(memory_space=pltpu.MemorySpace.SMEM),   # real-sample mask
            pl.BlockSpec(memory_space=pltpu.MemorySpace.SMEM),   # per-sample inner margin
        ],
        out_specs=pl.BlockSpec(memory_space=pltpu.MemorySpace.SMEM),
    )(fm, centers, real_mask, im_y)

    return loss2d[0, 0], fm


# ----------------------------- Pure-JAX reference ----------------------------- #

def _ref_aux_loss(feature_map_d, attentions, y, centers, alpha, margin, inner_margin_buf):
    """Pure-JAX reference matching the PyTorch forward (eval mode)."""
    B, N, H, W = feature_map_d.shape
    _, M, _, _ = attentions.shape
    a = attentions.reshape(B, M, H * W).astype(jnp.float32)
    f = feature_map_d.reshape(B, N, H * W).astype(jnp.float32)
    fm = jnp.einsum('bmh,bnh->bmn', a, f)
    fm = fm / jnp.maximum(jnp.linalg.norm(fm, axis=-1, keepdims=True), 1e-12)
    real_mask = (y == 0).astype(jnp.float32)[:, None, None]
    fcts = alpha * jnp.mean((fm - centers) * real_mask, axis=0) + centers
    im = inner_margin_buf[y]
    intra = jnp.mean(jax.nn.relu(
        jnp.sqrt(jnp.sum((fm - fcts) ** 2, axis=(1, 2))) * jnp.sign(im) - im))
    inter = 0.0
    for j in range(M):
        for k in range(j + 1, M):
            inter = inter + jax.nn.relu(margin - jnp.linalg.norm(fcts[j] - fcts[k]))
    inter = inter / M / alpha
    return intra + inter, fm


if __name__ == "__main__":
    key = jax.random.PRNGKey(0)
    B, M, N, H, W = 2, 2, 8, 32, 32      # HW = 1024 -> raw-f32 fast path, one 1024-wide HW tile

    k1, k2 = jax.random.split(key)
    feature_map_d = jax.random.normal(k1, (B, N, H, W), dtype=jnp.float32)
    attentions = jax.random.uniform(k2, (B, M, H, W), dtype=jnp.float32)
    y = jnp.array([0, 1], dtype=jnp.int32)

    # Buffers / hyperparams from __init__ (deterministic, matching defaults except M/N/shapes).
    feature_centers = jnp.zeros((M, N), dtype=jnp.float32)   # register_buffer('feature_centers')
    alpha = 0.05
    margin = 1.0
    inner_margin_buf = jnp.array([0.1, 5.0], dtype=jnp.float32)

    loss, fm = auxiliary_loss_v2(feature_map_d, attentions, y, feature_centers,
                                 alpha, margin, inner_margin_buf)
    jax.block_until_ready((loss, fm))

    ref_loss, ref_fm = _ref_aux_loss(feature_map_d, attentions, y, feature_centers,
                                     alpha, margin, inner_margin_buf)
    # f32 inputs end to end; tolerance covers the MXU's default-precision f32 matmul passes.
    assert jnp.allclose(fm, ref_fm, atol=2e-2, rtol=2e-2), \
        float(jnp.max(jnp.abs(fm - ref_fm)))
    assert jnp.allclose(loss, ref_loss, atol=2e-2, rtol=2e-2), (float(loss), float(ref_loss))

    print("KERNEL_OK")
</pallas_src>

<mosaic_0001>
module attributes {stable_mosaic.version = 11 : i64} {
  func.func @_pool_kernel(%arg0: i32, %arg1: i32, %arg2: memref<1x2x1024xf32, #tpu.memory_space<vmem>>, %arg3: memref<1x8x1024xf32, #tpu.memory_space<vmem>>, %arg4: memref<1x2x8xf32, #tpu.memory_space<vmem>>) attributes {dimension_semantics = [#tpu.dimension_semantics<parallel>, #tpu.dimension_semantics<arbitrary>], iteration_bounds = array<i64: 2, 1>, scalar_prefetch = 0 : i64, scratch_operands = 0 : i64, tpu.core_type = #tpu.core_type<tc>, window_params = [{transform_indices = @transform_0, window_bounds = array<i64: 1, 2, 1024>}, {transform_indices = @transform_1, window_bounds = array<i64: 1, 8, 1024>}, {transform_indices = @transform_2, window_bounds = array<i64: 1, 2, 8>}]} {
    %c0_i32 = arith.constant 0 : i32
    %0 = arith.cmpi eq, %arg1, %c0_i32 : i32
    %1 = arith.extui %0 : i1 to i32
    %c0_i32_0 = arith.constant 0 : i32
    %2 = arith.cmpi ne, %1, %c0_i32_0 : i32
    scf.if %2 {
      %cst_14 = arith.constant 0.000000e+00 : f32
      %15 = vector.broadcast %cst_14 : f32 to vector<1x2x8xf32>
      %c0_15 = arith.constant 0 : index
      %c0_16 = arith.constant 0 : index
      %c0_17 = arith.constant 0 : index
      %16 = vector.load %arg4[%c0_15, %c0_16, %c0_17] : memref<1x2x8xf32, #tpu.memory_space<vmem>>, vector<1x2x8xf32>
      tpu.vector_store %arg4[%c0_15, %c0_16, %c0_17], %15 {strides = array<i32>} : memref<1x2x8xf32, #tpu.memory_space<vmem>>, vector<1x2x8xf32>,
    } else {
    }
    %c0 = arith.constant 0 : index
    %c0_1 = arith.constant 0 : index
    %c0_2 = arith.constant 0 : index
    %3 = vector.load %arg2[%c0, %c0_1, %c0_2] : memref<1x2x1024xf32, #tpu.memory_space<vmem>>, vector<1x2x1024xf32>
    %4 = vector.shape_cast %3 : vector<1x2x1024xf32> to vector<2x1024xf32>
    %c0_3 = arith.constant 0 : index
    %c0_4 = arith.constant 0 : index
    %c0_5 = arith.constant 0 : index
    %5 = vector.load %arg3[%c0_3, %c0_4, %c0_5] : memref<1x8x1024xf32, #tpu.memory_space<vmem>>, vector<1x8x1024xf32>
    %6 = vector.shape_cast %5 : vector<1x8x1024xf32> to vector<8x1024xf32>
    %cst = arith.constant dense<0.000000e+00> : vector<2x8xf32>
    %7 = tpu.matmul %4, %6, %cst {dimension_numbers = #tpu.dot_dimension_numbers<[1], [1], [0], [0], [0, 0, 1, 0], [], []>} : vector<2x1024xf32>, vector<8x1024xf32>, vector<2x8xf32> -> vector<2x8xf32>
    %c0_6 = arith.constant 0 : index
    %c0_7 = arith.constant 0 : index
    %c0_8 = arith.constant 0 : index
    %8 = vector.load %arg4[%c0_6, %c0_7, %c0_8] : memref<1x2x8xf32, #tpu.memory_space<vmem>>, vector<1x2x8xf32>
    %9 = vector.shape_cast %7 : vector<2x8xf32> to vector<1x2x8xf32>
    %10 = arith.addf %8, %9 : vector<1x2x8xf32>
    %c0_9 = arith.constant 0 : index
    %c0_10 = arith.constant 0 : index
    %c0_11 = arith.constant 0 : index
    %11 = vector.load %arg4[%c0_9, %c0_10, %c0_11] : memref<1x2x8xf32, #tpu.memory_space<vmem>>, vector<1x2x8xf32>
    tpu.vector_store %arg4[%c0_9, %c0_10, %c0_11], %10 {strides = array<i32>} : memref<1x2x8xf32, #tpu.memory_space<vmem>>, vector<1x2x8xf32>,
    %c0_i32_12 = arith.constant 0 : i32
    %12 = arith.cmpi eq, %arg1, %c0_i32_12 : i32
    %13 = arith.extui %12 : i1 to i32
    %c0_i32_13 = arith.constant 0 : i32
    %14 = arith.cmpi ne, %13, %c0_i32_13 : i32
    scf.if %14 {
      %c0_14 = arith.constant 0 : index
      %c0_15 = arith.constant 0 : index
      %c0_16 = arith.constant 0 : index
      %15 = vector.load %arg4[%c0_14, %c0_15, %c0_16] : memref<1x2x8xf32, #tpu.memory_space<vmem>>, vector<1x2x8xf32>
      %16 = arith.mulf %15, %15 : vector<1x2x8xf32>
      %cst_17 = arith.constant dense<0.000000e+00> : vector<1x2xf32>
      %17 = vector.multi_reduction <add>, %16, %cst_17 [2] : vector<1x2x8xf32> to vector<1x2xf32>
      %18 = vector.shape_cast %17 : vector<1x2xf32> to vector<1x2x1xf32>
      %cst_18 = arith.constant 1.000000e-24 : f32
      %19 = vector.broadcast %cst_18 : f32 to vector<1x2x1xf32>
      %20 = arith.maximumf %18, %19 : vector<1x2x1xf32>
      %21 = math.rsqrt %20 : vector<1x2x1xf32>
      %22 = vector.broadcast %21 : vector<1x2x1xf32> to vector<1x2x8xf32>
      %23 = arith.mulf %15, %22 : vector<1x2x8xf32>
      %c0_19 = arith.constant 0 : index
      %c0_20 = arith.constant 0 : index
      %c0_21 = arith.constant 0 : index
      %24 = vector.load %arg4[%c0_19, %c0_20, %c0_21] : memref<1x2x8xf32, #tpu.memory_space<vmem>>, vector<1x2x8xf32>
      tpu.vector_store %arg4[%c0_19, %c0_20, %c0_21], %23 {strides = array<i32>} : memref<1x2x8xf32, #tpu.memory_space<vmem>>, vector<1x2x8xf32>,
    } else {
    }
    return
  }
  func.func @transform_0(%arg0: i32, %arg1: i32) -> (i32, i32, i32) {
    %c0_i32 = arith.constant 0 : i32
    %c0_i32_0 = arith.constant 0 : i32
    return %arg0, %c0_i32, %arg1 : i32, i32, i32
  }
  func.func @transform_1(%arg0: i32, %arg1: i32) -> (i32, i32, i32) {
    %c0_i32 = arith.constant 0 : i32
    %c0_i32_0 = arith.constant 0 : i32
    return %arg0, %c0_i32, %arg1 : i32, i32, i32
  }
  func.func @transform_2(%arg0: i32, %arg1: i32) -> (i32, i32, i32) {
    %c0_i32 = arith.constant 0 : i32
    %c0_i32_0 = arith.constant 0 : i32
    %c0_i32_1 = arith.constant 0 : i32
    return %arg0, %c0_i32, %c0_i32_0 : i32, i32, i32
  }
}

</mosaic_0001>

<bundles_post_ra>
// kernel: tpu_custom_call.1
= control target key start
LH: loop header
LB: loop body
LE: loop exit
PB: predicated region body
PF: predicated region fallthrough
CT: control target
= control target key end

     0   :  { %7 = vsyncpa [#allocation3], 0  ;;  %s1196_s0 = inlined_call_operand.hbm [shape: f32[2,2,1024], index: 0, kind: input, shape index: {}]   ;;  %s1197_s1 = inlined_call_operand.hbm [shape: f32[2,8,1024], index: 1, kind: input, shape index: {}]   ;;  %s1198_s2 = inlined_call_operand.hbm [shape: f32[2,2,8], index: 2, kind: output, shape index: {}]  }
   0x1   :  { %9 = vsyncpa [#allocation3 + $0x1], 0 }
   0x2   :  { %10 = vsyncpa [#allocation6], 0 }
   0x3   :  { %12 = vsyncpa [#allocation6 + $0x1], 0 }
   0x4   :  { %13 = vsyncpa [#allocation4], 0 }
   0x5   :  { %15 = vsyncpa [#allocation4 + $0x1], 0  ;;  %s958_s9 = smov 0   ;;  %s960_s10 = smov 0  }
   0x6   :  { %s962_s11 = smov 0   ;;  %s964_s12 = smov 0  }
   0x7   :  { %s966_s13 = smov 0   ;;  %s968_s14 = smov 0  }
   0x8 LB: > { %s697_s15 = sadd.s32 4294967295, %s936_s14   ;;  %s698_s16 = sadd.s32 4294967294, %s936_s14   ;;  %s936_s14 = sphi %s968_s14, %s21_s14   ;;  %s932_s13 = sphi %s966_s13, %s1218_s13   ;;  %s928_s12 = sphi %s964_s12, %s1217_s12   ;;  %s924_s11 = sphi %s962_s11, %s1216_s11   ;;  %s920_s10 = sphi %s960_s10, %s1215_s10   ;;  %s916_s9 = sphi %s958_s9, %s1214_s9  }
   0x9   : > { %s33_s17 = sadd.s32 1, %s932_s13  ;;  %s42_s18 = sadd.s32 1, %s924_s11 }
   0xa   : > { %p35_p0 = scmp.ge.s32.totalorder %s33_s17, 2  ;;  %p49_p1 = scmp.ne.s32.totalorder %s924_s11, %s920_s10 }
   0xb   : > { %p50_p2 = scmp.eq.s32.totalorder %s936_s14, 0  ;;  %p55_p3 = scmp.ne.s32.totalorder %s920_s10, %s916_s9 }
   0xc   : > { %s1220_s17 = smov (%p35_p0, %s33_s17), 0  ;;  %p56_p5 = scmp.eq.s32.totalorder %s697_s15, 0 }
   0xd   : > { %p999_p4 = por %p50_p2, %p49_p1  ;;  %s37_s20 = ssub.s32 %s932_s13, %s1220_s17 }
   0xe   : > { %p107_p6 = scmp.eq.s32.totalorder %s697_s15, 1  ;;  %p40_p7 = scmp.eq.s32.totalorder %s37_s20, 0 }
   0xf   : > { %p1005_p8 = por %p56_p5, %p55_p3  ;;  %p113_p10 = scmp.eq.s32.totalorder %s698_s16, 1 }
  0x10   : > { %p1009_p9 = por %p107_p6, %p49_p1  ;;  %p734_p13 = scmp.lt.s32.totalorder %s936_s14, 2 }
  0x11   : > { %s1202_s21 = scalar_select %p1005_p8, 1, 0 }
  0x12   : > { %s1203_s22 = scalar_select %p1009_p9, 1, 0 }
  0x13   : > { %s1014_s23 = scalar_select %p40_p7, %s924_s11, %s42_s18  }
  0x14   : > { %p1016_p11 = por %p113_p10, %p55_p3  ;;  %s1023_s25 = sand.u32 1, %s924_s11  }
  0x15   : > { %s701_s26 = sshll.u32 %s1023_s25, 4  ;;  %s715_s27 = sshll.u32 %s932_s13, 8 }
  0x16   : > { %s1204_s24 = scalar_select %p1016_p11, 1, 0 }
  0x17   : > { %s1030_s30 = scalar_lea.hbm %s1196_s0, %s715_s27  ;;  %s137_s3 = scalar_lea.vmem [#allocation2], %s701_s26 }
  0x18   : > { %s147_s4 = sshll.u32 %s137_s3, 4  ;;  %p1036_p0 = pnand %p734_p13, %p999_p4  ;;  %s1032_s4 = int_to_ptr.vmem [resolvable:$true] %s147_s4 }
  0x19   : > { %s134_s6 = scalar_lea.sflag [#allocation3], %s1023_s25  ;;  %s790_s7 = scalar_lea.hbm %s1030_s30, 256 }
  0x1a   : > { %p791_p3 = scmp.ne.s32.totalorder %s1030_s30, %s790_s7  ;;  %p792_p5 = pneg %p1036_p0 }
  0x1b   : > { %s795_s16 = scalar_lea.hbm %s1196_s0, 512  ;;  %p796_p4 = scmp.lt.u32.totalorder %s1030_s30, %s1196_s0 }
  0x1c   : > { %p793_p6 = pnand %p792_p5, %p791_p3  ;;  %p797_p10 = scmp.lt.u32.totalorder %s795_s16, %s790_s7 }
  0x1d   : > { %p799_p12 = scmp.lt.u32.totalorder %s790_s7, %s1030_s30 }
  0x1e   : > { %p794_p7 = pneg %p793_p6  ;;  %p798_p13 = por %p797_p10, %p796_p4 }
  0x20   : > { %p800_p1 = por %p799_p12, %p798_p13 }
  0x22   : > { %p801_p2 = pnand %p800_p1, %p794_p7 }
  0x24   : > { %804 = shalt.err (!%p801_p2)
}
  0x25   : > { %s805_s20 = scalar_lea.vmem %s1032_s4, 256  ;;  %s938_s26 = smov [#allocation2]  }
  0x26   : > { %p806_p3 = scmp.ne.s32.totalorder %s1032_s4, %s805_s20  ;;  %s810_s27 = sshll.u32 %s938_s26, 4  ;;  %s811_s27 = int_to_ptr.vmem [resolvable:$false] %s810_s27 }
  0x27   : > { %s812_s28 = scalar_lea.vmem %s811_s27, 512  ;;  %p813_p9 = scmp.lt.s32.totalorder %s1032_s4, %s811_s27 }
  0x28   : > { %p808_p6 = pnand %p806_p3, %p792_p5  ;;  %p814_p4 = scmp.lt.s32.totalorder %s812_s28, %s805_s20 }
  0x2a   : > { %p809_p11 = pneg %p808_p6  ;;  %p815_p10 = por %p814_p4, %p813_p9 }
  0x2c   : > { %p816_p12 = pnand %p815_p10, %p809_p11 }
  0x2e   : > { %819 = shalt.err (!%p816_p12)
}
  0x2f   : > { %726 = dma.hbm_to_vmem [thread:$0]  (!%p1036_p0), %s1030_s30, 256, %s1032_s4, %s134_s6  }
  0x30   : > { %p1206_p1 = scmp.lt.s32.totalorder %s936_s14, 3  ;;  %p1207_p2 = scmp.ge.s32.totalorder %s936_s14, 1 }
  0x31   : > { %s704_s3 = sshll.u32 %s1023_s25, 6  ;;  %s716_s7 = sshll.u32 %s932_s13, 10 }
  0x32   : > { %p1072_p7 = pnand %p1207_p2, %p1206_p1  ;;  %s1081_s16 = scalar_lea.hbm %s1197_s1, %s716_s7 }
  0x33   : > { %s158_s18 = scalar_lea.vmem [#allocation5], %s704_s3  ;;  %s155_s30 = scalar_lea.sflag [#allocation6], %s1023_s25 }
  0x34   : > { %s1208_s29 = scalar_select %p1072_p7, 1, 0 }
  0x35   : > { %s168_s19 = sshll.u32 %s158_s18, 4  ;;  %s820_s4 = scalar_lea.hbm %s1081_s16, 1024  ;;  %s169_s19 = int_to_ptr.vmem [resolvable:$true] %s168_s19 }
  0x36   : > { %p821_p9 = scmp.ne.s32.totalorder %s1081_s16, %s820_s4  ;;  %s825_s26 = scalar_lea.hbm %s1197_s1, 2048 }
  0x37   : > { %p826_p3 = scmp.lt.u32.totalorder %s1081_s16, %s1197_s1  ;;  %p827_p6 = scmp.lt.u32.totalorder %s825_s26, %s820_s4 }
  0x38   : > { %p823_p11 = pnand %p821_p9, %p792_p5  ;;  %p829_p10 = scmp.lt.u32.totalorder %s820_s4, %s1081_s16 }
  0x39   : > { %p828_p4 = por %p827_p6, %p826_p3 }
  0x3a   : > { %p824_p13 = pneg %p823_p11 }
  0x3b   : > { %p830_p12 = por %p829_p10, %p828_p4 }
  0x3d   : > { %p831_p1 = pnand %p830_p12, %p824_p13 }
  0x3f   : > { %834 = shalt.err (!%p831_p1)
}
  0x40   : > { %s835_s25 = scalar_lea.vmem %s169_s19, 1024  ;;  %s939_s3 = smov [#allocation5]  }
  0x41   : > { %p836_p2 = scmp.ne.s32.totalorder %s169_s19, %s835_s25  ;;  %s840_s7 = sshll.u32 %s939_s3, 4  ;;  %s841_s7 = int_to_ptr.vmem [resolvable:$false] %s840_s7 }
  0x42   : > { %s842_s8 = scalar_lea.vmem %s841_s7, 2048  ;;  %p843_p8 = scmp.lt.s32.totalorder %s169_s19, %s841_s7 }
  0x43   : > { %p838_p9 = pnand %p836_p2, %p792_p5  ;;  %p844_p7 = scmp.lt.s32.totalorder %s842_s8, %s835_s25 }
  0x45   : > { %p839_p11 = pneg %p838_p9  ;;  %p845_p3 = por %p844_p7, %p843_p8 }
  0x47   : > { %p846_p6 = pnand %p845_p3, %p839_p11 }
  0x49   : > { %849 = shalt.err (!%p846_p6)
}
  0x4a   : > { %729 = dma.hbm_to_vmem [thread:$0]  (!%p1036_p0), %s1081_s16, 1024, %s169_s19, %s155_s30  }
  0x4b   : > { %p1209_p13 = scmp.ne.s32.totalorder %s1208_s29, 0 }
  0x4c   : > { %s1106_s15 = sand.u32 (!%p1209_p13), 1, %s920_s10   ;;  %p1210_p5 = scmp.ne.s32.totalorder (!%p1209_p13), %s1202_s21, 0 }
  0x4d   : > { %177 = sbr.rel (%p1209_p13) target bundleno = 504 (0x1f8), region = 28  ;;  %s708_s18 = sshll.u32 (!%p1209_p13), %s1106_s15, 4 }
  0x4e   : > { %s180_s4 = scalar_lea.sflag (!%p1209_p13), [#allocation3], %s1106_s15  ;;  %s183_s6 = scalar_lea.vmem (!%p1209_p13), [#allocation2], %s708_s18 }
  0x54   : > { %903 = dma.done.wait (%p1210_p5), %s180_s4, 256  }
  0x55   : > { %905 = vsyncadd (%p1210_p5), %s180_s4, 4294967040  ;;  %s709_s5 = sshll.u32 %s1106_s15, 6  ;;  %s189_s29 = scalar_lea.sflag [#allocation6], %s1106_s15 }
  0x56   : > { %s1116_s16 = scalar_lea.vmem [#allocation5], %s709_s5 }
  0x57   : > { %907 = dma.done.wait (%p1210_p5), %s189_s29, 1024  }
  0x58   : > { %909 = vsyncadd (%p1210_p5), %s189_s29, 4294966272  ;;  %v242_v0 = vlaneseq  ;;  %v940_v1 = vmov 1983009808   ;;  %v229_v6 = vld [vmem:[%s1116_s16 + $0x8] sm:$0xff]  ;;  %v228_v7 = vld [vmem:[%s1116_s16] sm:$0xff]  ;;  %s710_s21 = sshll.u32 %s1106_s15, 1 }
  0x59   : > { %v240_v2 = vunpack.c.l.s4 %v940_v1  ;;  %v231_v8 = vld [vmem:[%s1116_s16 + $0x18] sm:$0xff]  ;;  %280 = vmatprep.subr.mxu0 %v229_v6  ;;  %v230_v9 = vld [vmem:[%s1116_s16 + $0x10] sm:$0xff]  ;;  %v233_v11 = vld [vmem:[%s1116_s16 + $0x28] sm:$0xff]  ;;  %vm224_vm0 = vcmask 58368   ;;  %s1131_s19 = scalar_lea.vmem [#allocation7], %s710_s21  ;;  %v941_v26 = vmov 0.0  }
  0x5a   : > { %v243_v3 = vshrl.u32 %v242_v0, 7  ;;  %350 = vmatprep.subr.mxu1 %v231_v8  ;;  %v226_v10 = vld [vmem:[%s183_s6] sm:$0xff]  ;;  %281 = vmatpush1.xpose.msra.mxu0 %v228_v7  ;;  %v235_v14 = vld [vmem:[%s1116_s16 + $0x38] sm:$0xff]  ;;  %225 = vst.msk [vmem:[%s1131_s19] sm:$0x3] %vm224_vm0, %v941_v26  ;;  %s712_s30 = sshll.u32 %s928_s12, 5 }
  0x5b   : > { %v241_v4 = vunpack.c.0.s8 %v240_v2  ;;  %351 = vmatpush1.xpose.msra.mxu1 %v230_v9  ;;  %v238_v13 = vcombine.high %v226_v10, %v226_v10  ;;  %420 = vmatprep.subr.mxu0 %v233_v11  ;;  %v227_v15 = vld [vmem:[%s183_s6 + $0x8] sm:$0xff]  ;;  %v232_v20 = vld [vmem:[%s1116_s16 + $0x20] sm:$0xff]  ;;  %v234_v24 = vld [vmem:[%s1116_s16 + $0x30] sm:$0xff]  ;;  %s590_s20 = sshll.u32 %s1131_s19, 4  ;;  %s1145_s28 = scalar_lea.hbm %s1198_s2, %s712_s30  ;;  %s1147_s20 = int_to_ptr.vmem [resolvable:$true] %s590_s20 }
  0x5c   : > { %490 = vmatprep.subr.mxu1 %v235_v14  ;;  %v255_v19 = vcombine.high %v227_v15, %v227_v15  ;;  %s577_s25 = scalar_lea.sflag [#allocation4], %s1106_s15  ;;  %s850_s3 = scalar_lea.vmem %s1147_s20, 32 }
  0x5d   : > { %v244_v5 = vsub.s32 %v241_v4, %v243_v3  ;;  %p851_p8 = scmp.ne.s32.totalorder %s1147_s20, %s850_s3  ;;  %p1211_p0 = scmp.ne.s32.totalorder %s1203_s22, 0 }
  0x5e   : > { %s942_s12 = smov [#allocation7]  }
  0x5f   : > { %v245_v12 = vrot.slane %v226_v10, %v244_v5  ;;  %v252_v17 = vrot.slane %v238_v13, %v244_v5  ;;  %v262_v18 = vrot.slane %v227_v15, %v244_v5  ;;  %v269_v23 = vrot.slane %v255_v19, %v244_v5  ;;  %p852_p7 = pnand %p851_p8, %p1211_p0  ;;  %s854_s7 = sshll.u32 %s942_s12, 4  ;;  %s855_s7 = int_to_ptr.vmem [resolvable:$false] %s854_s7 }
  0x60   : > { %s856_s8 = scalar_lea.vmem %s855_s7, 64  ;;  %p857_p10 = scmp.lt.s32.totalorder %s1147_s20, %s855_s7 }
  0x61   : > { %v253_v16 = vcombine.high %v245_v12, %v245_v12  ;;  %v254_v21 = vcombine.high %v252_v17, %v252_v17  ;;  %v270_v22 = vcombine.high %v262_v18, %v262_v18  ;;  %v271_v25 = vcombine.high %v269_v23, %v269_v23  ;;  %v560_v36 = vld [vmem:[%s1131_s19] sm:$0x3]  ;;  %p853_p4 = pneg %p852_p7  ;;  %p858_p12 = scmp.lt.s32.totalorder %s856_s8, %s850_s3 }
  0x63   : > { %344 = vmatprep.mubr.f32.mxu0 %v253_v16  ;;  %414 = vmatprep.mubr.f32.mxu1 %v254_v21  ;;  %p859_p1 = por %p858_p12, %p857_p10 }
  0x64   : > { %345 = vmatmul.mubr.f32.vlgmr.msra.gmra.mrb[0].mxu0 %v245_v12  ;;  %415 = vmatmul.mubr.f32.vlgmr.msra.gmra.mrb[0].mxu1 %v252_v17 }
  0x65   : > { %421 = vmatpush1.xpose.msra.mxu0 %v232_v20  ;;  %484 = vmatprep.mubr.f32.mxu0 %v270_v22  ;;  %p860_p2 = pnand %p859_p1, %p853_p4 }
  0x66   : > { %491 = vmatpush1.xpose.msra.mxu1 %v234_v24  ;;  %554 = vmatprep.mubr.f32.mxu1 %v271_v25 }
  0x68   : > { %485 = vmatmul.mubr.f32.vlgmr.msra.gmra.mrb[2].mxu0 %v262_v18 }
  0x69   : > { %555 = vmatmul.mubr.f32.vlgmr.msra.gmra.mrb[2].mxu1 %v269_v23 }
 0x137   : > { %v346_v27 = vpop.f32.mrb[0].mxu0  ;;  %v416_v29 = vpop.f32.mrb[0].mxu1 }
 0x138   : > { %v348_v28 = vpop.f32.mrb[1].mxu0  ;;  %v417_v30 = vadd.f32 %v416_v29, %v346_v27  ;;  %v418_v31 = vpop.f32.mrb[1].mxu1 }
 0x13b   : > { %v486_v32 = vpop.f32.mrb[2].mxu0 }
 0x13c   : > { %v487_v33 = vadd.f32 %v486_v32, %v417_v30  ;;  %v488_v34 = vpop.f32.mrb[3].mxu0  ;;  %v556_v35 = vpop.f32.mrb[2].mxu1 }
 0x13d   : > { %v558_v38 = vpop.f32.mrb[3].mxu1 }
 0x13e   : > { %v557_v37 = vadd.f32 %v556_v35, %v487_v33 }
 0x140   : > { %v561_v39 = vadd.f32 %v560_v36, %v557_v37 }
 0x142   : > { %563 = vst.msk [vmem:[%s1131_s19] sm:$0x3] %vm224_vm0, %v561_v39 }
 0x149   : > { %v567_v40 = vld [vmem:[%s1131_s19] sm:$0x3] }
 0x14a   : > { %v568_v41 = vmul.f32 %v567_v40, %v567_v40 }
 0x14c   : > { %v569_v42 = vsel %vm224_vm0, %v568_v41, 0.0 }
 0x14d   : > { %570 = vadd.xlane.f32.xlu0 %v569_v42 }
 0x1da   : > { %v571_v43 = vpop.xlane.xlu0 %570 }
 0x1db   : > { %v572_v44 = vmax.f32 %v571_v43, 1e-24 }
 0x1dd   : > { %788 = vrsqrt.f32 %v572_v44 }
 0x1e7   : > { %v789_v45 = vpop.eup %788 }
 0x1e8   : > { %v574_v46 = vmul.f32 %v789_v45, %v567_v40 }
 0x1ea   : > { %575 = vst.msk [vmem:[%s1131_s19] sm:$0x3] %vm224_vm0, %v574_v46 }
 0x1eb   : > { %863 = shalt.err (!%p860_p2)
}
 0x1ec   : > { %s864_s15 = scalar_lea.hbm %s1145_s28, 32  ;;  %s868_s6 = scalar_lea.hbm %s1198_s2, 64 }
 0x1ed   : > { %p865_p9 = scmp.ne.s32.totalorder %s1145_s28, %s864_s15  ;;  %p869_p6 = scmp.lt.u32.totalorder %s1145_s28, %s1198_s2 }
 0x1ee   : > { %p870_p13 = scmp.lt.u32.totalorder %s868_s6, %s864_s15  ;;  %p872_p8 = scmp.lt.u32.totalorder %s864_s15, %s1145_s28 }
 0x1ef   : > { %p866_p11 = pnand %p865_p9, %p1211_p0 }
 0x1f0   : > { %p871_p5 = por %p870_p13, %p869_p6 }
 0x1f1   : > { %p867_p3 = pneg %p866_p11 }
 0x1f2   : > { %p873_p7 = por %p872_p8, %p871_p5 }
 0x1f4   : > { %p874_p4 = pnand %p873_p7, %p867_p3 }
 0x1f6   : > { %877 = shalt.err (!%p874_p4)
}
 0x1f7   : > { %721 = dma.vmem_to_hbm [thread:$0]  (%p1211_p0), %s1147_s20, 32, %s1145_s28, %s577_s25  }
 0x1f8 PF: > { %s602_s16 = sand.u32 1, %s916_s9   ;;  %p1212_p10 = scmp.ne.s32.totalorder %s1204_s24, 0 }
 0x1f9   : > { %p1213_p12 = scmp.ge.s32.totalorder %s936_s14, 2  ;;  %s603_s21 = scalar_lea.sflag [#allocation4], %s602_s16 }
 0x1fb   : > { %p731_p1 = pnand %p1213_p12, %p1212_p10 }
 0x1fd   : > { %911 = dma.done.wait (!%p731_p1), %s603_s21, 32  }
 0x1fe   : > { %913 = vsyncadd (!%p731_p1), %s603_s21, 4294967264  ;;  %s21_s14 = sadd.s32 1, %s936_s14   ;;  %s1214_s9 = smov %s920_s10 }
 0x1ff   : > { %p18_p2 = scmp.ge.s32.totalorder %s21_s14, 4   ;;  %s1215_s10 = smov %s924_s11 }
 0x200   : > { %s1216_s11 = smov %s1014_s23  ;;  %s1217_s12 = smov %s932_s13 }
 0x201   : > { %s1218_s13 = smov %s1220_s17  ;;  %20 = sbr.rel (!%p18_p2) target bundleno = 8 (0x8), region = 94 }
 0x208   :  { %608 = vsyncpa [#allocation3], 1 }
 0x209   :  { %610 = vsyncpa [#allocation3 + $0x1], 1 }
 0x20a   :  { %611 = vsyncpa [#allocation6], 1 }
 0x20b   :  { %613 = vsyncpa [#allocation6 + $0x1], 1 }
 0x20c   :  { %614 = vsyncpa [#allocation4], 1 }
 0x20d   :  { %616 = vsyncpa [#allocation4 + $0x1], 1 }

</bundles_post_ra>
